<compile_context>
chip_gen: v7x
topology: tpu7x:2x2x1
jax: 0.10.0
libtpu: 0.0.40
codegen_flags: <defaults>
</compile_context>

<pallas_src>
import functools

import jax
import jax.numpy as jnp
from jax import lax
from jax.experimental import pallas as pl
from jax.experimental.pallas import tpu as pltpu

BN_EPS = 1e-5


def _round_up(n, m):
    return ((n + m - 1) // m) * m


def _sublane(dtype):
    # Rows per vreg sublane group for a given element width.
    return {4: 8, 2: 16, 1: 32}.get(jnp.dtype(dtype).itemsize, 8)


def _vmem_capacity_bytes():
    try:
        return int(pltpu.get_tpu_info().vmem_capacity_bytes)
    except Exception:
        return 64 * 1024 * 1024  # conservative (v7x per-TC) fallback


def _stacklinear_kernel(num_layers, mxu_dtype, x_ref, *rest):
    """rest = (w_0, b_0, w_1, b_1, ..., w_{L-1}, b_{L-1}, out_ref).

    x_ref : (tb, in_pad)            mxu_dtype   (streamed per grid step)
    w_l   : (in_l_pad, out_l_pad)   mxu_dtype   (VMEM-resident across steps)
    b_l   : (1, out_l_pad)          float32     (VMEM-resident across steps)
    out   : (tb, out_dim)           out dtype   (streamed, unpadded lanes)
    """
    out_ref = rest[-1]
    wb_refs = rest[:-1]

    h = x_ref[...]                                     # (tb, in_pad), mxu_dtype
    for l in range(num_layers):
        w = wb_refs[2 * l][...]
        # NOTE: layer loop is a Python unroll, so this bias broadcast is already
        # hoisted per layer; if ever converted to lax.fori_loop, pre-broadcast b.
        b = wb_refs[2 * l + 1][...]
        # MXU matmul with f32 accumulation; bias add in f32 on the VPU.
        h = jnp.dot(h, w, preferred_element_type=jnp.float32) + b
        if l != num_layers - 1:
            # Dropout(0.3) is identity in eval mode.
            # TODO(synk): training-mode stochastic dropout / batch-stat BN not implemented.
            h = jnp.tanh(h)              # f32 tanh on the EUP (v5e-safe)
            h = h.astype(mxu_dtype)      # narrow again for the next matmul
    # Store only the true output columns (full-extent, unpadded last dim).
    out_ref[...] = h[:, :out_ref.shape[-1]].astype(out_ref.dtype)


def stacklinear_forward(x, bn_params, weights, biases, *, block_batch=512,
                        mxu_dtype=jnp.bfloat16, out_dtype=jnp.float32):
    """Eval-mode StackLinear forward.

    x          : (B, input_dim)
    bn_params  : (gamma, beta, running_mean, running_var), each (input_dim,)
    weights[l] : (in_l, out_l)  -- already transposed vs. torch's (out, in)
    biases[l]  : (out_l,)
    """
    gamma, beta, mean, var = [jnp.asarray(p, jnp.float32) for p in bn_params]
    num_layers = len(weights)
    B, in_dim = x.shape
    out_dim = weights[-1].shape[1]

    # ---- Fold eval-mode BatchNorm1d into the first Linear (wrapper-side, f32).
    s = gamma * lax.rsqrt(var + BN_EPS)                        # (in_dim,)
    w0 = jnp.asarray(weights[0], jnp.float32)
    folded_w = [s[:, None] * w0] + [jnp.asarray(w, jnp.float32)
                                    for w in weights[1:]]
    folded_b = ([jnp.asarray(biases[0], jnp.float32) + (beta - mean * s) @ w0] +
                [jnp.asarray(b, jnp.float32) for b in biases[1:]])

    # ---- Zero-pad every feature dim (including in_dim) to 128-lane multiples.
    out_dims = [w.shape[1] for w in folded_w]
    in_pad = _round_up(in_dim, 128)
    pad_out = [_round_up(d, 128) for d in out_dims]
    pad_in = [in_pad] + pad_out[:-1]
    mxu_itemsize = jnp.dtype(mxu_dtype).itemsize
    out_itemsize = jnp.dtype(out_dtype).itemsize

    wp, bp = [], []
    for l in range(num_layers):
        w_full = jnp.zeros((pad_in[l], pad_out[l]), jnp.float32)
        w_full = w_full.at[:folded_w[l].shape[0], :folded_w[l].shape[1]].set(folded_w[l])
        b_full = jnp.zeros((1, pad_out[l]), jnp.float32)
        b_full = b_full.at[0, :out_dims[l]].set(folded_b[l])
        wp.append(w_full.astype(mxu_dtype))   # MXU operand dtype (bf16 by default)
        bp.append(b_full)                     # bias stays f32 (added post-accum)

    # ---- Batch tile: sublane-packed for the MXU dtype; cap when intermediates
    # are wide (>=1024 padded lanes) to bound the live f32 VMEM scratch.
    sub = _sublane(mxu_dtype)
    max_pad = max(pad_in + pad_out)
    if max_pad >= 1024:
        block_batch = min(block_batch, 256)
    tb = min(_round_up(block_batch, sub), _round_up(B, sub))
    Bp = _round_up(B, tb)
    xp = jnp.zeros((Bp, in_pad), mxu_dtype).at[:B, :in_dim].set(x.astype(mxu_dtype))
    grid = (Bp // tb,)

    # ---- VMEM budget from actual footprint, capped per generation.
    w_bytes = sum(pi * po * mxu_itemsize for pi, po in zip(pad_in, pad_out))
    b_bytes = sum(po * 4 for po in pad_out)
    footprint = (w_bytes + b_bytes
                 + 2 * tb * in_pad * mxu_itemsize        # x double-buffer
                 + 2 * tb * out_dim * out_itemsize       # out double-buffer
                 + 2 * tb * max(pad_out) * 4)            # live f32 intermediate (+copy)
    cap = _vmem_capacity_bytes()
    vmem_limit = int(min(int(cap * 0.75), max(2 * footprint, 16 * 1024 * 1024)))

    cost = pl.CostEstimate(
        flops=int(2 * Bp * sum(pi * po for pi, po in zip(pad_in, pad_out))),
        transcendentals=int(Bp * sum(pad_out[:-1])),
        bytes_accessed=int(int(xp.size) * mxu_itemsize + w_bytes + b_bytes
                           + Bp * out_dim * out_itemsize),
    )

    kernel = functools.partial(_stacklinear_kernel, num_layers, mxu_dtype)

    def _run(single_buffer_weights):
        def resident_spec(shape):
            # Grid-invariant operands: one VMEM buffer is enough.
            if single_buffer_weights:
                return pl.BlockSpec(shape, lambda i: (0, 0),
                                    pipeline_mode=pl.Buffered(1))
            return pl.BlockSpec(shape, lambda i: (0, 0))

        in_specs = [pl.BlockSpec((tb, in_pad), lambda i: (i, 0))]   # streamed
        args = [xp]
        for l in range(num_layers):
            in_specs.append(resident_spec(wp[l].shape))
            in_specs.append(resident_spec(bp[l].shape))
            args += [wp[l], bp[l]]

        return pl.pallas_call(
            kernel,
            grid=grid,
            in_specs=in_specs,
            # Unpadded, full-extent output lanes: no 16x padded-f32 writeback.
            out_specs=pl.BlockSpec((tb, out_dim), lambda i: (i, 0)),
            out_shape=jax.ShapeDtypeStruct((Bp, out_dim), out_dtype),
            compiler_params=pltpu.CompilerParams(
                dimension_semantics=("parallel",),   # megacore / v7x 2-TC split
                vmem_limit_bytes=vmem_limit,
            ),
            cost_estimate=cost,
        )(*args)

    try:
        out_p = _run(True)
    except Exception:
        # Fallback if this JAX/Mosaic version rejects single-buffered BlockSpecs.
        out_p = _run(False)

    return out_p[:B]


def init_params(key, input_dim, hidden_dim, output_dim, num_layers):
    """Deterministic init mirroring the PyTorch module's shapes."""
    dims = [input_dim] + [hidden_dim] * (num_layers - 1) + [output_dim]
    weights, biases = [], []
    for l in range(num_layers):
        key, kw, kb = jax.random.split(key, 3)
        fan_in, fan_out = dims[l], dims[l + 1]
        bound = 1.0 / jnp.sqrt(fan_in)
        # Stored pre-transposed: (in_features, out_features).
        weights.append(jax.random.uniform(kw, (fan_in, fan_out), jnp.float32,
                                          -bound, bound))
        biases.append(jax.random.uniform(kb, (fan_out,), jnp.float32,
                                         -bound, bound))
    # BatchNorm1d(input_dim) defaults.
    gamma = jnp.ones((input_dim,), jnp.float32)
    beta = jnp.zeros((input_dim,), jnp.float32)
    running_mean = jnp.zeros((input_dim,), jnp.float32)
    running_var = jnp.ones((input_dim,), jnp.float32)
    return (gamma, beta, running_mean, running_var), weights, biases


def reference_forward(x, bn_params, weights, biases):
    """Pure-f32 reference mirroring the PyTorch module in eval mode."""
    gamma, beta, mean, var = bn_params
    h = (x - mean) * lax.rsqrt(var + BN_EPS) * gamma + beta
    for l, (w, b) in enumerate(zip(weights, biases)):
        h = h @ w + b
        if l != len(weights) - 1:
            h = jnp.tanh(h)
    return h


if __name__ == "__main__":
    input_dim, hidden_dim, output_dim, num_layers = 16, 32, 8, 3
    batch = 16

    key = jax.random.PRNGKey(0)
    key, kx = jax.random.split(key)
    x = jax.random.normal(kx, (batch, input_dim), jnp.float32)

    bn_params, weights, biases = init_params(key, input_dim, hidden_dim,
                                             output_dim, num_layers)
    ref = reference_forward(x, bn_params, weights, biases)

    # Exact path (f32 MXU operands): tight tolerance. block_batch=8 with B=16
    # exercises the tiled/pipelined multi-step grid (grid=(2,)).
    out_f32 = stacklinear_forward(x, bn_params, weights, biases,
                                  block_batch=8, mxu_dtype=jnp.float32)
    out_f32 = jax.block_until_ready(out_f32)
    assert out_f32.shape == (batch, output_dim)
    assert jnp.allclose(out_f32, ref, atol=1e-4, rtol=1e-4), "f32 path mismatch"

    # Fast path (bf16 MXU operands, f32 accumulation): bf16-level tolerance.
    out_bf16 = stacklinear_forward(x, bn_params, weights, biases,
                                   block_batch=16, mxu_dtype=jnp.bfloat16)
    out_bf16 = jax.block_until_ready(out_bf16)
    assert out_bf16.shape == (batch, output_dim)
    assert jnp.allclose(out_bf16, ref, atol=5e-2, rtol=5e-2), "bf16 path mismatch"

    print("KERNEL_OK")
</pallas_src>

<mosaic_0001>
module attributes {stable_mosaic.version = 11 : i64} {
  func.func @_stacklinear_kernel(%arg0: i32, %arg1: memref<8x128xf32, #tpu.memory_space<vmem>>, %arg2: memref<128x128xf32, #tpu.memory_space<vmem>>, %arg3: memref<1x128xf32, #tpu.memory_space<vmem>>, %arg4: memref<128x128xf32, #tpu.memory_space<vmem>>, %arg5: memref<1x128xf32, #tpu.memory_space<vmem>>, %arg6: memref<128x128xf32, #tpu.memory_space<vmem>>, %arg7: memref<1x128xf32, #tpu.memory_space<vmem>>, %arg8: memref<8x8xf32, #tpu.memory_space<vmem>>) attributes {dimension_semantics = [#tpu.dimension_semantics<parallel>], iteration_bounds = array<i64: 2>, scalar_prefetch = 0 : i64, scratch_operands = 0 : i64, tpu.core_type = #tpu.core_type<tc>, window_params = [{transform_indices = @transform_0, window_bounds = array<i64: 8, 128>}, {pipeline_mode = #tpu.pipeline_mode<synchronous>, transform_indices = @transform_1, window_bounds = array<i64: 128, 128>}, {pipeline_mode = #tpu.pipeline_mode<synchronous>, transform_indices = @transform_2, window_bounds = array<i64: 1, 128>}, {pipeline_mode = #tpu.pipeline_mode<synchronous>, transform_indices = @transform_3, window_bounds = array<i64: 128, 128>}, {pipeline_mode = #tpu.pipeline_mode<synchronous>, transform_indices = @transform_4, window_bounds = array<i64: 1, 128>}, {pipeline_mode = #tpu.pipeline_mode<synchronous>, transform_indices = @transform_5, window_bounds = array<i64: 128, 128>}, {pipeline_mode = #tpu.pipeline_mode<synchronous>, transform_indices = @transform_6, window_bounds = array<i64: 1, 128>}, {transform_indices = @transform_7, window_bounds = array<i64: 8, 8>}]} {
    %c0 = arith.constant 0 : index
    %c0_0 = arith.constant 0 : index
    %0 = vector.load %arg1[%c0, %c0_0] : memref<8x128xf32, #tpu.memory_space<vmem>>, vector<8x128xf32>
    %c0_1 = arith.constant 0 : index
    %c0_2 = arith.constant 0 : index
    %1 = vector.load %arg2[%c0_1, %c0_2] : memref<128x128xf32, #tpu.memory_space<vmem>>, vector<128x128xf32>
    %c0_3 = arith.constant 0 : index
    %c0_4 = arith.constant 0 : index
    %2 = vector.load %arg3[%c0_3, %c0_4] : memref<1x128xf32, #tpu.memory_space<vmem>>, vector<1x128xf32>
    %cst = arith.constant dense<0.000000e+00> : vector<8x128xf32>
    %3 = tpu.matmul %0, %1, %cst {dimension_numbers = #tpu.dot_dimension_numbers<[1], [0], [0], [1], [0, 0, 1, 1], [], []>} : vector<8x128xf32>, vector<128x128xf32>, vector<8x128xf32> -> vector<8x128xf32>
    %4 = vector.broadcast %2 : vector<1x128xf32> to vector<8x128xf32>
    %5 = arith.addf %3, %4 : vector<8x128xf32>
    %6 = math.tanh %5 : vector<8x128xf32>
    %c0_5 = arith.constant 0 : index
    %c0_6 = arith.constant 0 : index
    %7 = vector.load %arg4[%c0_5, %c0_6] : memref<128x128xf32, #tpu.memory_space<vmem>>, vector<128x128xf32>
    %c0_7 = arith.constant 0 : index
    %c0_8 = arith.constant 0 : index
    %8 = vector.load %arg5[%c0_7, %c0_8] : memref<1x128xf32, #tpu.memory_space<vmem>>, vector<1x128xf32>
    %cst_9 = arith.constant dense<0.000000e+00> : vector<8x128xf32>
    %9 = tpu.matmul %6, %7, %cst_9 {dimension_numbers = #tpu.dot_dimension_numbers<[1], [0], [0], [1], [0, 0, 1, 1], [], []>} : vector<8x128xf32>, vector<128x128xf32>, vector<8x128xf32> -> vector<8x128xf32>
    %10 = vector.broadcast %8 : vector<1x128xf32> to vector<8x128xf32>
    %11 = arith.addf %9, %10 : vector<8x128xf32>
    %12 = math.tanh %11 : vector<8x128xf32>
    %c0_10 = arith.constant 0 : index
    %c0_11 = arith.constant 0 : index
    %13 = vector.load %arg6[%c0_10, %c0_11] : memref<128x128xf32, #tpu.memory_space<vmem>>, vector<128x128xf32>
    %c0_12 = arith.constant 0 : index
    %c0_13 = arith.constant 0 : index
    %14 = vector.load %arg7[%c0_12, %c0_13] : memref<1x128xf32, #tpu.memory_space<vmem>>, vector<1x128xf32>
    %cst_14 = arith.constant dense<0.000000e+00> : vector<8x128xf32>
    %15 = tpu.matmul %12, %13, %cst_14 {dimension_numbers = #tpu.dot_dimension_numbers<[1], [0], [0], [1], [0, 0, 1, 1], [], []>} : vector<8x128xf32>, vector<128x128xf32>, vector<8x128xf32> -> vector<8x128xf32>
    %16 = vector.broadcast %14 : vector<1x128xf32> to vector<8x128xf32>
    %17 = arith.addf %15, %16 : vector<8x128xf32>
    %18 = vector.extract_strided_slice %17 {offsets = [0, 0], sizes = [8, 8], strides = [1, 1]} : vector<8x128xf32> to vector<8x8xf32>
    %c0_15 = arith.constant 0 : index
    %c0_16 = arith.constant 0 : index
    %19 = vector.load %arg8[%c0_15, %c0_16] : memref<8x8xf32, #tpu.memory_space<vmem>>, vector<8x8xf32>
    tpu.vector_store %arg8[%c0_15, %c0_16], %18 {strides = array<i32>} : memref<8x8xf32, #tpu.memory_space<vmem>>, vector<8x8xf32>,
    return
  }
  func.func @transform_0(%arg0: i32) -> (i32, i32) {
    %c0_i32 = arith.constant 0 : i32
    %c0_i32_0 = arith.constant 0 : i32
    return %arg0, %c0_i32 : i32, i32
  }
  func.func @transform_1(%arg0: i32) -> (i32, i32) {
    %c0_i32 = arith.constant 0 : i32
    %c0_i32_0 = arith.constant 0 : i32
    %c0_i32_1 = arith.constant 0 : i32
    return %c0_i32, %c0_i32_0 : i32, i32
  }
  func.func @transform_2(%arg0: i32) -> (i32, i32) {
    %c0_i32 = arith.constant 0 : i32
    %c0_i32_0 = arith.constant 0 : i32
    %c0_i32_1 = arith.constant 0 : i32
    return %c0_i32, %c0_i32_0 : i32, i32
  }
  func.func @transform_3(%arg0: i32) -> (i32, i32) {
    %c0_i32 = arith.constant 0 : i32
    %c0_i32_0 = arith.constant 0 : i32
    %c0_i32_1 = arith.constant 0 : i32
    return %c0_i32, %c0_i32_0 : i32, i32
  }
  func.func @transform_4(%arg0: i32) -> (i32, i32) {
    %c0_i32 = arith.constant 0 : i32
    %c0_i32_0 = arith.constant 0 : i32
    %c0_i32_1 = arith.constant 0 : i32
    return %c0_i32, %c0_i32_0 : i32, i32
  }
  func.func @transform_5(%arg0: i32) -> (i32, i32) {
    %c0_i32 = arith.constant 0 : i32
    %c0_i32_0 = arith.constant 0 : i32
    %c0_i32_1 = arith.constant 0 : i32
    return %c0_i32, %c0_i32_0 : i32, i32
  }
  func.func @transform_6(%arg0: i32) -> (i32, i32) {
    %c0_i32 = arith.constant 0 : i32
    %c0_i32_0 = arith.constant 0 : i32
    %c0_i32_1 = arith.constant 0 : i32
    return %c0_i32, %c0_i32_0 : i32, i32
  }
  func.func @transform_7(%arg0: i32) -> (i32, i32) {
    %c0_i32 = arith.constant 0 : i32
    %c0_i32_0 = arith.constant 0 : i32
    return %arg0, %c0_i32 : i32, i32
  }
}

module attributes {stable_mosaic.version = 11 : i64} {
  func.func @_stacklinear_kernel(%arg0: i32, %arg1: memref<8x128xf32, #tpu.memory_space<vmem>>, %arg2: memref<128x128xf32, #tpu.memory_space<vmem>>, %arg3: memref<1x128xf32, #tpu.memory_space<vmem>>, %arg4: memref<128x128xf32, #tpu.memory_space<vmem>>, %arg5: memref<1x128xf32, #tpu.memory_space<vmem>>, %arg6: memref<128x128xf32, #tpu.memory_space<vmem>>, %arg7: memref<1x128xf32, #tpu.memory_space<vmem>>, %arg8: memref<8x8xf32, #tpu.memory_space<vmem>>) attributes {dimension_semantics = [#tpu.dimension_semantics<parallel>], iteration_bounds = array<i64: 2>, scalar_prefetch = 0 : i64, scratch_operands = 0 : i64, tpu.core_type = #tpu.core_type<tc>, window_params = [{transform_indices = @transform_0, window_bounds = array<i64: 8, 128>}, {pipeline_mode = #tpu.pipeline_mode<synchronous>, transform_indices = @transform_1, window_bounds = array<i64: 128, 128>}, {pipeline_mode = #tpu.pipeline_mode<synchronous>, transform_indices = @transform_2, window_bounds = array<i64: 1, 128>}, {pipeline_mode = #tpu.pipeline_mode<synchronous>, transform_indices = @transform_3, window_bounds = array<i64: 128, 128>}, {pipeline_mode = #tpu.pipeline_mode<synchronous>, transform_indices = @transform_4, window_bounds = array<i64: 1, 128>}, {pipeline_mode = #tpu.pipeline_mode<synchronous>, transform_indices = @transform_5, window_bounds = array<i64: 128, 128>}, {pipeline_mode = #tpu.pipeline_mode<synchronous>, transform_indices = @transform_6, window_bounds = array<i64: 1, 128>}, {transform_indices = @transform_7, window_bounds = array<i64: 8, 8>}]} {
    %c0 = arith.constant 0 : index
    %c0_0 = arith.constant 0 : index
    %0 = vector.load %arg1[%c0, %c0_0] : memref<8x128xf32, #tpu.memory_space<vmem>>, vector<8x128xf32>
    %c0_1 = arith.constant 0 : index
    %c0_2 = arith.constant 0 : index
    %1 = vector.load %arg2[%c0_1, %c0_2] : memref<128x128xf32, #tpu.memory_space<vmem>>, vector<128x128xf32>
    %c0_3 = arith.constant 0 : index
    %c0_4 = arith.constant 0 : index
    %2 = vector.load %arg3[%c0_3, %c0_4] : memref<1x128xf32, #tpu.memory_space<vmem>>, vector<1x128xf32>
    %cst = arith.constant dense<0.000000e+00> : vector<8x128xf32>
    %3 = tpu.matmul %0, %1, %cst {dimension_numbers = #tpu.dot_dimension_numbers<[1], [0], [0], [1], [0, 0, 1, 1], [], []>} : vector<8x128xf32>, vector<128x128xf32>, vector<8x128xf32> -> vector<8x128xf32>
    %4 = vector.broadcast %2 : vector<1x128xf32> to vector<8x128xf32>
    %5 = arith.addf %3, %4 : vector<8x128xf32>
    %6 = math.tanh %5 : vector<8x128xf32>
    %c0_5 = arith.constant 0 : index
    %c0_6 = arith.constant 0 : index
    %7 = vector.load %arg4[%c0_5, %c0_6] : memref<128x128xf32, #tpu.memory_space<vmem>>, vector<128x128xf32>
    %c0_7 = arith.constant 0 : index
    %c0_8 = arith.constant 0 : index
    %8 = vector.load %arg5[%c0_7, %c0_8] : memref<1x128xf32, #tpu.memory_space<vmem>>, vector<1x128xf32>
    %cst_9 = arith.constant dense<0.000000e+00> : vector<8x128xf32>
    %9 = tpu.matmul %6, %7, %cst_9 {dimension_numbers = #tpu.dot_dimension_numbers<[1], [0], [0], [1], [0, 0, 1, 1], [], []>} : vector<8x128xf32>, vector<128x128xf32>, vector<8x128xf32> -> vector<8x128xf32>
    %10 = vector.broadcast %8 : vector<1x128xf32> to vector<8x128xf32>
    %11 = arith.addf %9, %10 : vector<8x128xf32>
    %12 = math.tanh %11 : vector<8x128xf32>
    %c0_10 = arith.constant 0 : index
    %c0_11 = arith.constant 0 : index
    %13 = vector.load %arg6[%c0_10, %c0_11] : memref<128x128xf32, #tpu.memory_space<vmem>>, vector<128x128xf32>
    %c0_12 = arith.constant 0 : index
    %c0_13 = arith.constant 0 : index
    %14 = vector.load %arg7[%c0_12, %c0_13] : memref<1x128xf32, #tpu.memory_space<vmem>>, vector<1x128xf32>
    %cst_14 = arith.constant dense<0.000000e+00> : vector<8x128xf32>
    %15 = tpu.matmul %12, %13, %cst_14 {dimension_numbers = #tpu.dot_dimension_numbers<[1], [0], [0], [1], [0, 0, 1, 1], [], []>} : vector<8x128xf32>, vector<128x128xf32>, vector<8x128xf32> -> vector<8x128xf32>
    %16 = vector.broadcast %14 : vector<1x128xf32> to vector<8x128xf32>
    %17 = arith.addf %15, %16 : vector<8x128xf32>
    %18 = vector.extract_strided_slice %17 {offsets = [0, 0], sizes = [8, 8], strides = [1, 1]} : vector<8x128xf32> to vector<8x8xf32>
    %c0_15 = arith.constant 0 : index
    %c0_16 = arith.constant 0 : index
    %19 = vector.load %arg8[%c0_15, %c0_16] : memref<8x8xf32, #tpu.memory_space<vmem>>, vector<8x8xf32>
    tpu.vector_store %arg8[%c0_15, %c0_16], %18 {strides = array<i32>} : memref<8x8xf32, #tpu.memory_space<vmem>>, vector<8x8xf32>,
    return
  }
  func.func @transform_0(%arg0: i32) -> (i32, i32) {
    %c0_i32 = arith.constant 0 : i32
    %c0_i32_0 = arith.constant 0 : i32
    return %arg0, %c0_i32 : i32, i32
  }
  func.func @transform_1(%arg0: i32) -> (i32, i32) {
    %c0_i32 = arith.constant 0 : i32
    %c0_i32_0 = arith.constant 0 : i32
    %c0_i32_1 = arith.constant 0 : i32
    return %c0_i32, %c0_i32_0 : i32, i32
  }
  func.func @transform_2(%arg0: i32) -> (i32, i32) {
    %c0_i32 = arith.constant 0 : i32
    %c0_i32_0 = arith.constant 0 : i32
    %c0_i32_1 = arith.constant 0 : i32
    return %c0_i32, %c0_i32_0 : i32, i32
  }
  func.func @transform_3(%arg0: i32) -> (i32, i32) {
    %c0_i32 = arith.constant 0 : i32
    %c0_i32_0 = arith.constant 0 : i32
    %c0_i32_1 = arith.constant 0 : i32
    return %c0_i32, %c0_i32_0 : i32, i32
  }
  func.func @transform_4(%arg0: i32) -> (i32, i32) {
    %c0_i32 = arith.constant 0 : i32
    %c0_i32_0 = arith.constant 0 : i32
    %c0_i32_1 = arith.constant 0 : i32
    return %c0_i32, %c0_i32_0 : i32, i32
  }
  func.func @transform_5(%arg0: i32) -> (i32, i32) {
    %c0_i32 = arith.constant 0 : i32
    %c0_i32_0 = arith.constant 0 : i32
    %c0_i32_1 = arith.constant 0 : i32
    return %c0_i32, %c0_i32_0 : i32, i32
  }
  func.func @transform_6(%arg0: i32) -> (i32, i32) {
    %c0_i32 = arith.constant 0 : i32
    %c0_i32_0 = arith.constant 0 : i32
    %c0_i32_1 = arith.constant 0 : i32
    return %c0_i32, %c0_i32_0 : i32, i32
  }
  func.func @transform_7(%arg0: i32) -> (i32, i32) {
    %c0_i32 = arith.constant 0 : i32
    %c0_i32_0 = arith.constant 0 : i32
    return %arg0, %c0_i32 : i32, i32
  }
}

</mosaic_0001>

<bundles_post_ra>
// kernel: tpu_custom_call.1
= control target key start
LH: loop header
LB: loop body
LE: loop exit
PB: predicated region body
PF: predicated region fallthrough
CT: control target
= control target key end

     0   :  { %12 = vsyncpa [#allocation3], 0  ;;  %s1506_s0 = inlined_call_operand.hbm [shape: f32[16,128], index: 0, kind: input, shape index: {}]   ;;  %s1507_s1 = inlined_call_operand.hbm [shape: f32[128,128], index: 1, kind: input, shape index: {}]   ;;  %s1508_s2 = inlined_call_operand.vmem [shape: f32[1,128], index: 2, kind: input, shape index: {}]   ;;  %s1509_s3 = inlined_call_operand.hbm [shape: f32[128,128], index: 3, kind: input, shape index: {}]   ;;  %s1510_s4 = inlined_call_operand.vmem [shape: f32[1,128], index: 4, kind: input, shape index: {}]   ;;  %s1511_s5 = inlined_call_operand.hbm [shape: f32[128,128], index: 5, kind: input, shape index: {}]   ;;  %s1512_s6 = inlined_call_operand.vmem [shape: f32[1,128], index: 6, kind: input, shape index: {}]   ;;  %s1513_s7 = inlined_call_operand.vmem [shape: f32[16,8], index: 7, kind: output, shape index: {}]  }
   0x1   :  { %14 = vsyncpa [#allocation3 + $0x1], 0 }
   0x2   :  { %15 = vsyncpa [#allocation5], 0 }
   0x3   :  { %16 = vsyncpa [#allocation8], 0  ;;  %s1249_s24 = smov 0   ;;  %s1251_s25 = smov 0  }
   0x4   :  { %s1253_s26 = smov 0   ;;  %s1255_s27 = smov 0  }
   0x5 LB: > { %s1268_s28 = sadd.s32 4294967295, %s1198_s27   ;;  %p42_p0 = scmp.ne.s32.totalorder %s1190_s25, %s1186_s24  ;;  %s1198_s27 = sphi %s1255_s27, %s1531_s27   ;;  %s1194_s26 = sphi %s1253_s26, %s1530_s26   ;;  %s1190_s25 = sphi %s1251_s25, %s1529_s25   ;;  %s1186_s24 = sphi %s1249_s24, %s1528_s24  }
   0x6   : > { %p1514_p1 = scmp.eq.s32.totalorder %s1268_s28, 0  ;;  %p717_p2 = scmp.ge.s32.totalorder %s1198_s27, 1 }
   0x7   : > { %p205_p3 = scmp.lt.s32.totalorder %s1198_s27, 3  ;;  %s1200_s8 = smov [#allocation4]  }
   0x8   : > { %p1276_p4 = por %p1514_p1, %p42_p0  ;;  %s217_s9 = sshll.u32 %s1200_s8, 4  ;;  %s1284_s9 = int_to_ptr.vmem [resolvable:$true] %s217_s9 }
   0x9   : > { %p1280_p5 = pnand %p717_p2, %p205_p3  ;;  %s1201_s11 = smov [#allocation6]  }
   0xa   : > { %s1517_s29 = scalar_select %p1276_p4, 1, 0 }
   0xb   : > { %s1518_s30 = scalar_select %p1280_p5, 1, 0 }
   0xc   : > { %p977_p6 = pneg %p1280_p5  ;;  %s233_s12 = sshll.u32 %s1201_s11, 4  ;;  %s1294_s12 = int_to_ptr.vmem [resolvable:$true] %s233_s12 }
   0xd   : > { %s1202_s13 = smov [#allocation7]   ;;  %s1042_s17 = scalar_lea.hbm %s1507_s1, 2048 }
   0xe   : > { %p1290_p7 = pnand %p977_p6, %p1514_p1  ;;  %s1296_s14 = sshll.u32 %s1202_s13, 4  ;;  %s250_s14 = int_to_ptr.vmem [resolvable:$true] %s1296_s14 }
   0xf   : > { %p1043_p8 = scmp.ne.s32.totalorder %s1507_s1, %s1042_s17  ;;  %p1049_p12 = scmp.lt.u32.totalorder %s1042_s17, %s1507_s1 }
  0x10   : > { %p1306_p9 = pneg %p1290_p7 }
  0x12   : > { %p1045_p10 = pnand %p1306_p9, %p1043_p8 }
  0x14   : > { %p1046_p11 = pneg %p1045_p10 }
  0x16   : > { %p1051_p13 = pnand %p1049_p12, %p1046_p11 }
  0x18   : > { %1054 = shalt.err (!%p1051_p13)
}
  0x19   : > { %s1055_s23 = scalar_lea.vmem %s1284_s9, 2048  ;;  %p1063_p6 = scmp.lt.s32.totalorder %s1284_s9, %s1284_s9 }
  0x1a   : > { %p1056_p0 = scmp.ne.s32.totalorder %s1284_s9, %s1055_s23  ;;  %p1064_p1 = scmp.lt.s32.totalorder %s1055_s23, %s1055_s23 }
  0x1c   : > { %p1058_p2 = pnand %p1056_p0, %p1306_p9  ;;  %p1065_p8 = por %p1064_p1, %p1063_p6 }
  0x1e   : > { %p1059_p3 = pneg %p1058_p2 }
  0x20   : > { %p1066_p10 = pnand %p1065_p8, %p1059_p3 }
  0x22   : > { %1069 = shalt.err (!%p1066_p10)
}
  0x23   : > { %s1203_s24 = smov 128   ;;  %s1204_s8 = smov 8  }
  0x24   : > { %980 = dma.hbm_to_vmem [thread:$0]  (!%p1290_p7), %s1507_s1, 2048, %s1284_s9, [#allocation5], %s1203_s24, %s1203_s24, %s1204_s8  }
  0x25   : > { %s1070_s17 = scalar_lea.hbm %s1509_s3, 2048 }
  0x26   : > { %p1071_p1 = scmp.ne.s32.totalorder %s1509_s3, %s1070_s17  ;;  %p1077_p13 = scmp.lt.u32.totalorder %s1070_s17, %s1509_s3 }
  0x28   : > { %p1073_p11 = pnand %p1071_p1, %p1306_p9 }
  0x2a   : > { %p1074_p12 = pneg %p1073_p11 }
  0x2c   : > { %p1079_p0 = pnand %p1077_p13, %p1074_p12 }
  0x2e   : > { %1082 = shalt.err (!%p1079_p0)
}
  0x2f   : > { %s1083_s9 = scalar_lea.vmem %s1294_s12, 2048  ;;  %p1091_p8 = scmp.lt.s32.totalorder %s1294_s12, %s1294_s12 }
  0x30   : > { %p1084_p2 = scmp.ne.s32.totalorder %s1294_s12, %s1083_s9  ;;  %p1092_p10 = scmp.lt.s32.totalorder %s1083_s9, %s1083_s9 }
  0x32   : > { %p1086_p3 = pnand %p1084_p2, %p1306_p9  ;;  %p1093_p1 = por %p1092_p10, %p1091_p8 }
  0x34   : > { %p1087_p6 = pneg %p1086_p3 }
  0x36   : > { %p1094_p11 = pnand %p1093_p1, %p1087_p6 }
  0x38   : > { %1097 = shalt.err (!%p1094_p11)
}
  0x39   : > { %983 = dma.hbm_to_vmem [thread:$0]  (!%p1290_p7), %s1509_s3, 2048, %s1294_s12, [#allocation5], %s1203_s24, %s1203_s24, %s1204_s8  }
  0x3a   : > { %s1098_s16 = scalar_lea.hbm %s1511_s5, 2048 }
  0x3b   : > { %p1099_p12 = scmp.ne.s32.totalorder %s1511_s5, %s1098_s16  ;;  %p1105_p2 = scmp.lt.u32.totalorder %s1098_s16, %s1511_s5 }
  0x3d   : > { %p1101_p13 = pnand %p1099_p12, %p1306_p9 }
  0x3f   : > { %p1102_p0 = pneg %p1101_p13 }
  0x41   : > { %p1107_p3 = pnand %p1105_p2, %p1102_p0 }
  0x43   : > { %1110 = shalt.err (!%p1107_p3)
}
  0x44   : > { %s1111_s22 = scalar_lea.vmem %s250_s14, 2048  ;;  %p1119_p1 = scmp.lt.s32.totalorder %s250_s14, %s250_s14 }
  0x45   : > { %p1112_p6 = scmp.ne.s32.totalorder %s250_s14, %s1111_s22  ;;  %p1120_p11 = scmp.lt.s32.totalorder %s1111_s22, %s1111_s22 }
  0x47   : > { %p1114_p8 = pnand %p1112_p6, %p1306_p9  ;;  %p1121_p4 = por %p1120_p11, %p1119_p1 }
  0x49   : > { %p1115_p10 = pneg %p1114_p8 }
  0x4b   : > { %p1122_p5 = pnand %p1121_p4, %p1115_p10 }
  0x4d   : > { %1125 = shalt.err (!%p1122_p5)
}
  0x4e   : > { %986 = dma.hbm_to_vmem [thread:$0]  (!%p1290_p7), %s1511_s5, 2048, %s250_s14, [#allocation8], %s1203_s24, %s1203_s24, %s1204_s8  }
  0x4f   : > { %s1379_s20 = sadd.s32 1, %s1198_s27   ;;  %s29_s23 = sadd.s32 1, %s1194_s26 }
  0x50   : > { %s26_s10 = ssub.s32 %s1198_s27, %s1379_s20  ;;  %p36_p5 = scmp.ne.s32.totalorder %s1194_s26, %s1190_s25 }
  0x51   : > { %p27_p4 = scmp.eq.s32.totalorder %s26_s10, 0  ;;  %p37_p9 = scmp.eq.s32.totalorder %s1198_s27, 0 }
  0x52   : > { %p994_p12 = scmp.lt.s32.totalorder %s1198_s27, 2  ;;  %s266_s13 = sand.u32 1, %s1194_s26  }
  0x53   : > { %s1389_s11 = scalar_select %p27_p4, %s1194_s26, %s29_s23  }
  0x54   : > { %p38_p13 = por %p37_p9, %p36_p5  ;;  %s722_s15 = sshll.u32 %s266_s13, 3 }
  0x55   : > { %s723_s16 = sshll.u32 %s1198_s27, 7  ;;  %s270_s14 = scalar_lea.vmem [#allocation2], %s722_s15 }
  0x56   : > { %s1396_s19 = scalar_lea.hbm %s1506_s0, %s723_s16  ;;  %s277_s24 = sshll.u32 %s270_s14, 4  ;;  %s1398_s24 = int_to_ptr.vmem [resolvable:$true] %s277_s24 }
  0x57   : > { %p1400_p7 = pnand %p994_p12, %p38_p13  ;;  %s267_s27 = scalar_lea.sflag [#allocation3], %s266_s13 }
  0x58   : > { %s1126_s21 = scalar_lea.hbm %s1396_s19, 128  ;;  %s1131_s9 = scalar_lea.hbm %s1506_s0, 256 }
  0x59   : > { %p1127_p0 = scmp.ne.s32.totalorder %s1396_s19, %s1126_s21  ;;  %p1128_p2 = pneg %p1400_p7 }
  0x5a   : > { %p1132_p8 = scmp.lt.u32.totalorder %s1396_s19, %s1506_s0  ;;  %p1133_p10 = scmp.lt.u32.totalorder %s1131_s9, %s1126_s21 }
  0x5b   : > { %p1129_p3 = pnand %p1128_p2, %p1127_p0  ;;  %p1135_p11 = scmp.lt.u32.totalorder %s1126_s21, %s1396_s19 }
  0x5c   : > { %p1134_p1 = por %p1133_p10, %p1132_p8 }
  0x5d   : > { %p1130_p6 = pneg %p1129_p3 }
  0x5e   : > { %p1136_p4 = por %p1135_p11, %p1134_p1 }
  0x60   : > { %p1137_p5 = pnand %p1136_p4, %p1130_p6 }
  0x62   : > { %1140 = shalt.err (!%p1137_p5)
}
  0x63   : > { %s1141_s13 = scalar_lea.vmem %s1398_s24, 128  ;;  %s1205_s15 = smov [#allocation2]  }
  0x64   : > { %p1142_p9 = scmp.ne.s32.totalorder %s1398_s24, %s1141_s13  ;;  %s1146_s16 = sshll.u32 %s1205_s15, 4  ;;  %s1147_s16 = int_to_ptr.vmem [resolvable:$false] %s1146_s16 }
  0x65   : > { %s1148_s17 = scalar_lea.vmem %s1147_s16, 256  ;;  %p1149_p0 = scmp.lt.s32.totalorder %s1398_s24, %s1147_s16 }
  0x66   : > { %p1144_p12 = pnand %p1142_p9, %p1128_p2  ;;  %p1150_p3 = scmp.lt.s32.totalorder %s1148_s17, %s1141_s13 }
  0x68   : > { %p1145_p13 = pneg %p1144_p12  ;;  %p1151_p8 = por %p1150_p3, %p1149_p0 }
  0x6a   : > { %p1152_p10 = pnand %p1151_p8, %p1145_p13 }
  0x6c   : > { %1155 = shalt.err (!%p1152_p10)
}
  0x6d   : > { %990 = dma.hbm_to_vmem [thread:$0]  (!%p1400_p7), %s1396_s19, 128, %s1398_s24, %s267_s27  }
  0x6e   : > { %p1522_p6 = scmp.ne.s32.totalorder %s1518_s30, 0 }
  0x6f   : > { %s288_s18 = sand.u32 (!%p1522_p6), 1, %s1190_s25   ;;  %p1523_p2 = scmp.ne.s32.totalorder (!%p1522_p6), %s1517_s29, 0 }
  0x70   : > { %286 = sbr.rel (%p1522_p6) target bundleno = 825 (0x339), region = 48  ;;  %s1432_s14 = sshll.u32 (!%p1522_p6), %s288_s18, 3 }
  0x71   : > { %s289_s21 = scalar_lea.sflag (!%p1522_p6), [#allocation3], %s288_s18  ;;  %s292_s22 = scalar_lea.vmem (!%p1522_p6), [#allocation2], %s1432_s14 }
  0x77   : > { %1173 = dma.done.wait (%p1523_p2), %s289_s21, 128  }
  0x78   : > { %1175 = vsyncadd (%p1523_p2), %s289_s21, 4294967168  ;;  %p1524_p1 = scmp.eq.s32.totalorder %s1268_s28, 0 }
  0x7a   : > { %1177 = dma.done.wait (%p1524_p1), [#allocation5], 4096   ;;  %p1525_p7 = pmov %p1524_p1 }
  0x7b   : > { %p1526_p11 = pmov %p1524_p1 }
  0x7c   : > { %1179 = vsyncadd (%p1525_p7), [#allocation5], 4294963200 }
  0x7d   : > { %1181 = dma.done.wait (%p1526_p11), [#allocation8], 2048   ;;  %p1527_p4 = pmov %p1524_p1 }
  0x7e   : > { %v1206_v0 = vmov 0.0|0.0   ;;  %vm1207_vm0 = vmmov 0   ;;  %v1208_v1 = vmov 0.0   ;;  %v339_v2 = vld [vmem:[#allocation4] sm:$0xff]  ;;  %v340_v3 = vld [vmem:[#allocation4 + $0x8] sm:$0xff]  ;;  %v341_v4 = vld [vmem:[#allocation4 + $0x10] sm:$0xff] }
  0x7f   : > { %1183 = vsyncadd (%p1527_p4), [#allocation8], 4294965248  ;;  %891 = vmatprep.subr.bf16.mxu0 %v1206_v0  ;;  %818 = vmatprep.mubr.msk.f32.mxu0 %vm1207_vm0, %v1208_v1  ;;  %v892_v5 = vpack.c.bf16 %v340_v3, %v339_v2  ;;  %v342_v6 = vld [vmem:[#allocation4 + $0x18] sm:$0xff]  ;;  %v343_v8 = vld [vmem:[#allocation4 + $0x20] sm:$0xff]  ;;  %p334_p5 = scmp.lt.s32.totalorder %s1268_s28, 1  ;;  %vm620_vm1 = vcmask 64512  }
  0x80   : > { %915 = vmatprep.subr.bf16.mxu1 %v1206_v0  ;;  %853 = vmatprep.mubr.msk.f32.mxu1 %vm1207_vm0, %v1208_v1  ;;  %v895_v7 = vpack.c.bf16 %v342_v6, %v341_v4  ;;  %v344_v9 = vld [vmem:[#allocation4 + $0x28] sm:$0xff]  ;;  %v433_v10 = vld [vmem:[#allocation6] sm:$0xff]  ;;  %v435_v12 = vld [vmem:[#allocation6 + $0x10] sm:$0xff] }
  0x81   : > { %893 = vmatpush3.bf16.msra.mxu0 %v892_v5  ;;  %v434_v11 = vld [vmem:[#allocation6 + $0x8] sm:$0xff]  ;;  %v436_v13 = vld [vmem:[#allocation6 + $0x18] sm:$0xff]  ;;  %v898_v14 = vpack.c.bf16 %v344_v9, %v343_v8  ;;  %v345_v16 = vld [vmem:[#allocation4 + $0x30] sm:$0xff]  ;;  %s1533_s28 = smov (!%p334_p5, %s1268_s28), 1 }
  0x82   : > { %894 = vmatprep.subr.bf16.mxu0 %v1206_v0  ;;  %v916_v15 = vpack.c.bf16 %v434_v11, %v433_v10  ;;  %v346_v17 = vld [vmem:[#allocation4 + $0x38] sm:$0xff]  ;;  %v919_v18 = vpack.c.bf16 %v436_v13, %v435_v12  ;;  %v437_v19 = vld [vmem:[#allocation6 + $0x20] sm:$0xff]  ;;  %v438_v20 = vld [vmem:[#allocation6 + $0x28] sm:$0xff]  ;;  %s729_s8 = sshll.u32 %s1533_s28, 3 }
  0x83   : > { %v901_v21 = vpack.c.bf16 %v346_v17, %v345_v16  ;;  %v347_v22 = vld [vmem:[#allocation4 + $0x40] sm:$0xff]  ;;  %v348_v23 = vld [vmem:[#allocation4 + $0x48] sm:$0xff]  ;;  %v922_v24 = vpack.c.bf16 %v438_v20, %v437_v19  ;;  %v439_v25 = vld [vmem:[#allocation6 + $0x30] sm:$0xff]  ;;  %s337_s23 = scalar_lea.vmem %s1513_s7, %s729_s8 }
  0x84   : > { %917 = vmatpush3.bf16.msra.mxu1 %v916_v15  ;;  %v440_v26 = vld [vmem:[#allocation6 + $0x38] sm:$0xff]  ;;  %v904_v27 = vpack.c.bf16 %v348_v23, %v347_v22  ;;  %v349_v28 = vld [vmem:[#allocation4 + $0x50] sm:$0xff]  ;;  %v441_v31 = vld [vmem:[#allocation6 + $0x40] sm:$0xff] }
  0x85   : > { %896 = vmatpush3.bf16.msra.mxu0 %v895_v7  ;;  %918 = vmatprep.subr.bf16.mxu1 %v1206_v0  ;;  %v350_v29 = vld [vmem:[#allocation4 + $0x58] sm:$0xff]  ;;  %v925_v30 = vpack.c.bf16 %v440_v26, %v439_v25  ;;  %v442_v32 = vld [vmem:[#allocation6 + $0x48] sm:$0xff]  ;;  %v351_v34 = vld [vmem:[#allocation4 + $0x60] sm:$0xff] }
  0x86   : > { %897 = vmatprep.subr.bf16.mxu0 %v1206_v0  ;;  %v907_v33 = vpack.c.bf16 %v350_v29, %v349_v28  ;;  %v352_v35 = vld [vmem:[#allocation4 + $0x68] sm:$0xff]  ;;  %v928_v36 = vpack.c.bf16 %v442_v32, %v441_v31  ;;  %v353_v38 = vld [vmem:[#allocation4 + $0x70] sm:$0xff]  ;;  %v354_v39 = vld [vmem:[#allocation4 + $0x78] sm:$0xff] }
  0x87   : > { %v910_v37 = vpack.c.bf16 %v352_v35, %v351_v34  ;;  %v913_v40 = vpack.c.bf16 %v354_v39, %v353_v38  ;;  %v338_v41 = vld [vmem:[%s292_s22] sm:$0xff]  ;;  %v445_v45 = vld [vmem:[#allocation6 + $0x60] sm:$0xff]  ;;  %v446_v46 = vld [vmem:[#allocation6 + $0x68] sm:$0xff] }
  0x88   : > { %920 = vmatpush3.bf16.msra.mxu1 %v919_v18  ;;  %v443_v42 = vld [vmem:[#allocation6 + $0x50] sm:$0xff]  ;;  %v444_v43 = vld [vmem:[#allocation6 + $0x58] sm:$0xff]  ;;  %v934_v47 = vpack.c.bf16 %v446_v46, %v445_v45  ;;  %v527_v51 = vld [vmem:[#allocation7] sm:$0xff] }
  0x89   : > { %899 = vmatpush3.bf16.msra.mxu0 %v898_v14  ;;  %921 = vmatprep.subr.bf16.mxu1 %v1206_v0  ;;  %v931_v44 = vpack.c.bf16 %v444_v43, %v443_v42  ;;  %v447_v48 = vld [vmem:[#allocation6 + $0x70] sm:$0xff]  ;;  %v448_v49 = vld [vmem:[#allocation6 + $0x78] sm:$0xff]  ;;  %v528_v52 = vld [vmem:[#allocation7 + $0x8] sm:$0xff] }
  0x8a   : > { %900 = vmatprep.subr.bf16.mxu0 %v1206_v0  ;;  %v937_v50 = vpack.c.bf16 %v448_v49, %v447_v48  ;;  %v529_v53 = vld [vmem:[#allocation7 + $0x10] sm:$0xff]  ;;  %v940_v54 = vpack.c.bf16 %v528_v52, %v527_v51  ;;  %v530_v55 = vld [vmem:[#allocation7 + $0x18] sm:$0xff]  ;;  %v531_v57 = vld [vmem:[#allocation7 + $0x20] sm:$0xff] }
  0x8b   : > { %v943_v56 = vpack.c.bf16 %v530_v55, %v529_v53  ;;  %v532_v58 = vld [vmem:[#allocation7 + $0x28] sm:$0xff]  ;;  %v533_v60 = vld [vmem:[#allocation7 + $0x30] sm:$0xff]  ;;  %v534_v61 = vld [vmem:[#allocation7 + $0x38] sm:$0xff] }
  0x8c   : > { %923 = vmatpush3.bf16.msra.mxu1 %v922_v24  ;;  %v946_v59 = vpack.c.bf16 %v532_v58, %v531_v57  ;;  %v949_v62 = vpack.c.bf16 %v534_v61, %v533_v60  ;;  %v535_v63 = vld [vmem:[#allocation7 + $0x40] sm:$0xff]  ;;  %v730_v3 = vld [vmem:[%s1508_s2] ss:$0 sm:$0xff]  ;;  %v538_v9 = vld [vmem:[#allocation7 + $0x58] sm:$0xff] }
  0x8d   : > { %902 = vmatpush3.bf16.msra.mxu0 %v901_v21  ;;  %924 = vmatprep.subr.bf16.mxu1 %v1206_v0  ;;  %v537_v8 = vld [vmem:[#allocation7 + $0x50] sm:$0xff]  ;;  %v539_v11 = vld [vmem:[#allocation7 + $0x60] sm:$0xff]  ;;  %v540_v12 = vld [vmem:[#allocation7 + $0x68] sm:$0xff] }
  0x8e   : > { %903 = vmatprep.subr.bf16.mxu0 %v1206_v0  ;;  %v955_v10 = vpack.c.bf16 %v538_v9, %v537_v8  ;;  %v958_v13 = vpack.c.bf16 %v540_v12, %v539_v11  ;;  %v541_v14 = vld [vmem:[#allocation7 + $0x70] sm:$0xff]  ;;  %v542_v15 = vld [vmem:[#allocation7 + $0x78] sm:$0xff] }
  0x8f   : > { %v961_v16 = vpack.c.bf16 %v542_v15, %v541_v14  ;;  %v731_v17 = vld [vmem:[%s1510_s4] ss:$0 sm:$0xff] }
  0x90   : > { %926 = vmatpush3.bf16.msra.mxu1 %v925_v30  ;;  %v732_v22 = vld [vmem:[%s1512_s6] ss:$0 sm:$0xff] }
  0x91   : > { %905 = vmatpush3.bf16.msra.mxu0 %v904_v27  ;;  %927 = vmatprep.subr.bf16.mxu1 %v1206_v0 }
  0x92   : > { %906 = vmatprep.subr.bf16.mxu0 %v1206_v0 }
  0x94   : > { %929 = vmatpush3.bf16.msra.mxu1 %v928_v36 }
  0x95   : > { %908 = vmatpush3.bf16.msra.mxu0 %v907_v33  ;;  %930 = vmatprep.subr.bf16.mxu1 %v1206_v0 }
  0x96   : > { %909 = vmatprep.subr.bf16.mxu0 %v1206_v0 }
  0x98   : > { %932 = vmatpush3.bf16.msra.mxu1 %v931_v44 }
  0x99   : > { %911 = vmatpush3.bf16.msra.mxu0 %v910_v37  ;;  %933 = vmatprep.subr.bf16.mxu1 %v1206_v0 }
  0x9a   : > { %912 = vmatprep.subr.bf16.mxu0 %v1206_v0 }
  0x9c   : > { %935 = vmatpush3.bf16.msra.mxu1 %v934_v47 }
  0x9d   : > { %914 = vmatpush3.bf16.msra.mxu0 %v913_v40  ;;  %936 = vmatprep.subr.bf16.mxu1 %v1206_v0 }
  0x9e   : > { %939 = vmatprep.subr.bf16.mxu0 %v1206_v0 }
  0xa0   : > { %819 = vmatmul.mubr.f32.vlgmr.msra.gmra.mrb[0].mxu0 %v338_v41  ;;  %938 = vmatpush3.bf16.msra.mxu1 %v937_v50 }
  0xa1   : > { %888 = vmatprep.mubr.msk.f32.mxu0 %vm1207_vm0, %v1208_v1  ;;  %941 = vmatpush3.bf16.msra.mxu0 %v940_v54  ;;  %v536_v1 = vld [vmem:[#allocation7 + $0x48] sm:$0xff] }
  0xa2   : > { %942 = vmatprep.subr.bf16.mxu0 %v1206_v0  ;;  %v952_v2 = vpack.c.bf16 %v536_v1, %v535_v63 }
  0xa5   : > { %944 = vmatpush3.bf16.msra.mxu0 %v943_v56 }
  0xa6   : > { %945 = vmatprep.subr.bf16.mxu0 %v1206_v0 }
  0xa9   : > { %947 = vmatpush3.bf16.msra.mxu0 %v946_v59 }
  0xaa   : > { %948 = vmatprep.subr.bf16.mxu0 %v1206_v0 }
  0xad   : > { %950 = vmatpush3.bf16.msra.mxu0 %v949_v62 }
  0xae   : > { %951 = vmatprep.subr.bf16.mxu0 %v1206_v0 }
  0xb1   : > { %953 = vmatpush3.bf16.msra.mxu0 %v952_v2 }
  0xb2   : > { %954 = vmatprep.subr.bf16.mxu0 %v1206_v0 }
  0xb5   : > { %956 = vmatpush3.bf16.msra.mxu0 %v955_v10 }
  0xb6   : > { %957 = vmatprep.subr.bf16.mxu0 %v1206_v0 }
  0xb9   : > { %959 = vmatpush3.bf16.msra.mxu0 %v958_v13 }
  0xba   : > { %960 = vmatprep.subr.bf16.mxu0 %v1206_v0 }
  0xbd   : > { %962 = vmatpush3.bf16.msra.mxu0 %v961_v16 }
 0x173   : > { %v428_v4 = vpop.f32.mrb[0].mxu0 }
 0x174   : > { %v429_v5 = vadd.f32 %v730_v3, %v428_v4  ;;  %v820_v6 = vpop.f32.mrb[1].mxu0 }
 0x176   : > { %1038 = vtanh.f32 %v429_v5 }
 0x180   : > { %v1039_v7 = vpop.eup %1038 }
 0x181   : > { %854 = vmatmul.mubr.f32.vlgmr.msra.gmra.mrb[0].mxu1 %v1039_v7 }
 0x254   : > { %v522_v18 = vpop.f32.mrb[0].mxu1 }
 0x255   : > { %v523_v19 = vadd.f32 %v731_v17, %v522_v18  ;;  %v855_v20 = vpop.f32.mrb[1].mxu1 }
 0x257   : > { %1040 = vtanh.f32 %v523_v19 }
 0x261   : > { %v1041_v21 = vpop.eup %1040 }
 0x262   : > { %889 = vmatmul.mubr.f32.vlgmr.msra.gmra.mrb[2].mxu0 %v1041_v21 }
 0x335   : > { %v616_v0 = vpop.f32.mrb[2].mxu0 }
 0x336   : > { %v617_v23 = vadd.f32 %v732_v22, %v616_v0  ;;  %v890_v24 = vpop.f32.mrb[3].mxu0 }
 0x338   : > { %621 = vst.msk [vmem:[%s337_s23] sm:$0xff] %vm620_vm1, %v617_v23 }
 0x339 PF: > { %p19_p9 = scmp.ge.s32.totalorder %s1379_s20, 4   ;;  %s1528_s24 = smov %s1190_s25 }
 0x33a   : > { %s1529_s25 = smov %s1194_s26  ;;  %s1530_s26 = smov %s1389_s11 }
 0x33b   : > { %s1531_s27 = smov %s1379_s20  ;;  %21 = sbr.rel (!%p19_p9) target bundleno = 5 (0x5), region = 100 }
 0x342   :  { %641 = vsyncpa [#allocation3], 1 }
 0x343   :  { %643 = vsyncpa [#allocation3 + $0x1], 1 }
 0x344   :  { %644 = vsyncpa [#allocation5], 1 }
 0x345   :  { %645 = vsyncpa [#allocation8], 1 }

// kernel: tpu_custom_call.1
= control target key start
LH: loop header
LB: loop body
LE: loop exit
PB: predicated region body
PF: predicated region fallthrough
CT: control target
= control target key end

     0   :  { %12 = vsyncpa [#allocation3], 0  ;;  %s1506_s0 = inlined_call_operand.hbm [shape: f32[16,128], index: 0, kind: input, shape index: {}]   ;;  %s1507_s1 = inlined_call_operand.hbm [shape: f32[128,128], index: 1, kind: input, shape index: {}]   ;;  %s1508_s2 = inlined_call_operand.vmem [shape: f32[1,128], index: 2, kind: input, shape index: {}]   ;;  %s1509_s3 = inlined_call_operand.hbm [shape: f32[128,128], index: 3, kind: input, shape index: {}]   ;;  %s1510_s4 = inlined_call_operand.vmem [shape: f32[1,128], index: 4, kind: input, shape index: {}]   ;;  %s1511_s5 = inlined_call_operand.hbm [shape: f32[128,128], index: 5, kind: input, shape index: {}]   ;;  %s1512_s6 = inlined_call_operand.vmem [shape: f32[1,128], index: 6, kind: input, shape index: {}]   ;;  %s1513_s7 = inlined_call_operand.vmem [shape: f32[16,8], index: 7, kind: output, shape index: {}]  }
   0x1   :  { %14 = vsyncpa [#allocation3 + $0x1], 0 }
   0x2   :  { %15 = vsyncpa [#allocation5], 0 }
   0x3   :  { %16 = vsyncpa [#allocation8], 0  ;;  %s1249_s24 = smov 0   ;;  %s1251_s25 = smov 0  }
   0x4   :  { %s1253_s26 = smov 0   ;;  %s1255_s27 = smov 0  }
   0x5 LB: > { %s1268_s28 = sadd.s32 4294967295, %s1198_s27   ;;  %p42_p0 = scmp.ne.s32.totalorder %s1190_s25, %s1186_s24  ;;  %s1198_s27 = sphi %s1255_s27, %s1531_s27   ;;  %s1194_s26 = sphi %s1253_s26, %s1530_s26   ;;  %s1190_s25 = sphi %s1251_s25, %s1529_s25   ;;  %s1186_s24 = sphi %s1249_s24, %s1528_s24  }
   0x6   : > { %p1514_p1 = scmp.eq.s32.totalorder %s1268_s28, 0  ;;  %p717_p2 = scmp.ge.s32.totalorder %s1198_s27, 1 }
   0x7   : > { %p205_p3 = scmp.lt.s32.totalorder %s1198_s27, 3  ;;  %s1200_s8 = smov [#allocation4]  }
   0x8   : > { %p1276_p4 = por %p1514_p1, %p42_p0  ;;  %s217_s9 = sshll.u32 %s1200_s8, 4  ;;  %s1284_s9 = int_to_ptr.vmem [resolvable:$true] %s217_s9 }
   0x9   : > { %p1280_p5 = pnand %p717_p2, %p205_p3  ;;  %s1201_s11 = smov [#allocation6]  }
   0xa   : > { %s1517_s29 = scalar_select %p1276_p4, 1, 0 }
   0xb   : > { %s1518_s30 = scalar_select %p1280_p5, 1, 0 }
   0xc   : > { %p977_p6 = pneg %p1280_p5  ;;  %s233_s12 = sshll.u32 %s1201_s11, 4  ;;  %s1294_s12 = int_to_ptr.vmem [resolvable:$true] %s233_s12 }
   0xd   : > { %s1202_s13 = smov [#allocation7]   ;;  %s1042_s17 = scalar_lea.hbm %s1507_s1, 2048 }
   0xe   : > { %p1290_p7 = pnand %p977_p6, %p1514_p1  ;;  %s1296_s14 = sshll.u32 %s1202_s13, 4  ;;  %s250_s14 = int_to_ptr.vmem [resolvable:$true] %s1296_s14 }
   0xf   : > { %p1043_p8 = scmp.ne.s32.totalorder %s1507_s1, %s1042_s17  ;;  %p1049_p12 = scmp.lt.u32.totalorder %s1042_s17, %s1507_s1 }
  0x10   : > { %p1306_p9 = pneg %p1290_p7 }
  0x12   : > { %p1045_p10 = pnand %p1306_p9, %p1043_p8 }
  0x14   : > { %p1046_p11 = pneg %p1045_p10 }
  0x16   : > { %p1051_p13 = pnand %p1049_p12, %p1046_p11 }
  0x18   : > { %1054 = shalt.err (!%p1051_p13)
}
  0x19   : > { %s1055_s23 = scalar_lea.vmem %s1284_s9, 2048  ;;  %p1063_p6 = scmp.lt.s32.totalorder %s1284_s9, %s1284_s9 }
  0x1a   : > { %p1056_p0 = scmp.ne.s32.totalorder %s1284_s9, %s1055_s23  ;;  %p1064_p1 = scmp.lt.s32.totalorder %s1055_s23, %s1055_s23 }
  0x1c   : > { %p1058_p2 = pnand %p1056_p0, %p1306_p9  ;;  %p1065_p8 = por %p1064_p1, %p1063_p6 }
  0x1e   : > { %p1059_p3 = pneg %p1058_p2 }
  0x20   : > { %p1066_p10 = pnand %p1065_p8, %p1059_p3 }
  0x22   : > { %1069 = shalt.err (!%p1066_p10)
}
  0x23   : > { %s1203_s24 = smov 128   ;;  %s1204_s8 = smov 8  }
  0x24   : > { %980 = dma.hbm_to_vmem [thread:$0]  (!%p1290_p7), %s1507_s1, 2048, %s1284_s9, [#allocation5], %s1203_s24, %s1203_s24, %s1204_s8  }
  0x25   : > { %s1070_s17 = scalar_lea.hbm %s1509_s3, 2048 }
  0x26   : > { %p1071_p1 = scmp.ne.s32.totalorder %s1509_s3, %s1070_s17  ;;  %p1077_p13 = scmp.lt.u32.totalorder %s1070_s17, %s1509_s3 }
  0x28   : > { %p1073_p11 = pnand %p1071_p1, %p1306_p9 }
  0x2a   : > { %p1074_p12 = pneg %p1073_p11 }
  0x2c   : > { %p1079_p0 = pnand %p1077_p13, %p1074_p12 }
  0x2e   : > { %1082 = shalt.err (!%p1079_p0)
}
  0x2f   : > { %s1083_s9 = scalar_lea.vmem %s1294_s12, 2048  ;;  %p1091_p8 = scmp.lt.s32.totalorder %s1294_s12, %s1294_s12 }
  0x30   : > { %p1084_p2 = scmp.ne.s32.totalorder %s1294_s12, %s1083_s9  ;;  %p1092_p10 = scmp.lt.s32.totalorder %s1083_s9, %s1083_s9 }
  0x32   : > { %p1086_p3 = pnand %p1084_p2, %p1306_p9  ;;  %p1093_p1 = por %p1092_p10, %p1091_p8 }
  0x34   : > { %p1087_p6 = pneg %p1086_p3 }
  0x36   : > { %p1094_p11 = pnand %p1093_p1, %p1087_p6 }
  0x38   : > { %1097 = shalt.err (!%p1094_p11)
}
  0x39   : > { %983 = dma.hbm_to_vmem [thread:$0]  (!%p1290_p7), %s1509_s3, 2048, %s1294_s12, [#allocation5], %s1203_s24, %s1203_s24, %s1204_s8  }
  0x3a   : > { %s1098_s16 = scalar_lea.hbm %s1511_s5, 2048 }
  0x3b   : > { %p1099_p12 = scmp.ne.s32.totalorder %s1511_s5, %s1098_s16  ;;  %p1105_p2 = scmp.lt.u32.totalorder %s1098_s16, %s1511_s5 }
  0x3d   : > { %p1101_p13 = pnand %p1099_p12, %p1306_p9 }
  0x3f   : > { %p1102_p0 = pneg %p1101_p13 }
  0x41   : > { %p1107_p3 = pnand %p1105_p2, %p1102_p0 }
  0x43   : > { %1110 = shalt.err (!%p1107_p3)
}
  0x44   : > { %s1111_s22 = scalar_lea.vmem %s250_s14, 2048  ;;  %p1119_p1 = scmp.lt.s32.totalorder %s250_s14, %s250_s14 }
  0x45   : > { %p1112_p6 = scmp.ne.s32.totalorder %s250_s14, %s1111_s22  ;;  %p1120_p11 = scmp.lt.s32.totalorder %s1111_s22, %s1111_s22 }
  0x47   : > { %p1114_p8 = pnand %p1112_p6, %p1306_p9  ;;  %p1121_p4 = por %p1120_p11, %p1119_p1 }
  0x49   : > { %p1115_p10 = pneg %p1114_p8 }
  0x4b   : > { %p1122_p5 = pnand %p1121_p4, %p1115_p10 }
  0x4d   : > { %1125 = shalt.err (!%p1122_p5)
}
  0x4e   : > { %986 = dma.hbm_to_vmem [thread:$0]  (!%p1290_p7), %s1511_s5, 2048, %s250_s14, [#allocation8], %s1203_s24, %s1203_s24, %s1204_s8  }
  0x4f   : > { %s1379_s20 = sadd.s32 1, %s1198_s27   ;;  %s29_s23 = sadd.s32 1, %s1194_s26 }
  0x50   : > { %s26_s10 = ssub.s32 %s1198_s27, %s1379_s20  ;;  %p36_p5 = scmp.ne.s32.totalorder %s1194_s26, %s1190_s25 }
  0x51   : > { %p27_p4 = scmp.eq.s32.totalorder %s26_s10, 0  ;;  %p37_p9 = scmp.eq.s32.totalorder %s1198_s27, 0 }
  0x52   : > { %p994_p12 = scmp.lt.s32.totalorder %s1198_s27, 2  ;;  %s266_s13 = sand.u32 1, %s1194_s26  }
  0x53   : > { %s1389_s11 = scalar_select %p27_p4, %s1194_s26, %s29_s23  }
  0x54   : > { %p38_p13 = por %p37_p9, %p36_p5  ;;  %s722_s15 = sshll.u32 %s266_s13, 3 }
  0x55   : > { %s723_s16 = sshll.u32 %s1198_s27, 7  ;;  %s270_s14 = scalar_lea.vmem [#allocation2], %s722_s15 }
  0x56   : > { %s1396_s19 = scalar_lea.hbm %s1506_s0, %s723_s16  ;;  %s277_s24 = sshll.u32 %s270_s14, 4  ;;  %s1398_s24 = int_to_ptr.vmem [resolvable:$true] %s277_s24 }
  0x57   : > { %p1400_p7 = pnand %p994_p12, %p38_p13  ;;  %s267_s27 = scalar_lea.sflag [#allocation3], %s266_s13 }
  0x58   : > { %s1126_s21 = scalar_lea.hbm %s1396_s19, 128  ;;  %s1131_s9 = scalar_lea.hbm %s1506_s0, 256 }
  0x59   : > { %p1127_p0 = scmp.ne.s32.totalorder %s1396_s19, %s1126_s21  ;;  %p1128_p2 = pneg %p1400_p7 }
  0x5a   : > { %p1132_p8 = scmp.lt.u32.totalorder %s1396_s19, %s1506_s0  ;;  %p1133_p10 = scmp.lt.u32.totalorder %s1131_s9, %s1126_s21 }
  0x5b   : > { %p1129_p3 = pnand %p1128_p2, %p1127_p0  ;;  %p1135_p11 = scmp.lt.u32.totalorder %s1126_s21, %s1396_s19 }
  0x5c   : > { %p1134_p1 = por %p1133_p10, %p1132_p8 }
  0x5d   : > { %p1130_p6 = pneg %p1129_p3 }
  0x5e   : > { %p1136_p4 = por %p1135_p11, %p1134_p1 }
  0x60   : > { %p1137_p5 = pnand %p1136_p4, %p1130_p6 }
  0x62   : > { %1140 = shalt.err (!%p1137_p5)
}
  0x63   : > { %s1141_s13 = scalar_lea.vmem %s1398_s24, 128  ;;  %s1205_s15 = smov [#allocation2]  }
  0x64   : > { %p1142_p9 = scmp.ne.s32.totalorder %s1398_s24, %s1141_s13  ;;  %s1146_s16 = sshll.u32 %s1205_s15, 4  ;;  %s1147_s16 = int_to_ptr.vmem [resolvable:$false] %s1146_s16 }
  0x65   : > { %s1148_s17 = scalar_lea.vmem %s1147_s16, 256  ;;  %p1149_p0 = scmp.lt.s32.totalorder %s1398_s24, %s1147_s16 }
  0x66   : > { %p1144_p12 = pnand %p1142_p9, %p1128_p2  ;;  %p1150_p3 = scmp.lt.s32.totalorder %s1148_s17, %s1141_s13 }
  0x68   : > { %p1145_p13 = pneg %p1144_p12  ;;  %p1151_p8 = por %p1150_p3, %p1149_p0 }
  0x6a   : > { %p1152_p10 = pnand %p1151_p8, %p1145_p13 }
  0x6c   : > { %1155 = shalt.err (!%p1152_p10)
}
  0x6d   : > { %990 = dma.hbm_to_vmem [thread:$0]  (!%p1400_p7), %s1396_s19, 128, %s1398_s24, %s267_s27  }
  0x6e   : > { %p1522_p6 = scmp.ne.s32.totalorder %s1518_s30, 0 }
  0x6f   : > { %s288_s18 = sand.u32 (!%p1522_p6), 1, %s1190_s25   ;;  %p1523_p2 = scmp.ne.s32.totalorder (!%p1522_p6), %s1517_s29, 0 }
  0x70   : > { %286 = sbr.rel (%p1522_p6) target bundleno = 825 (0x339), region = 48  ;;  %s1432_s14 = sshll.u32 (!%p1522_p6), %s288_s18, 3 }
  0x71   : > { %s289_s21 = scalar_lea.sflag (!%p1522_p6), [#allocation3], %s288_s18  ;;  %s292_s22 = scalar_lea.vmem (!%p1522_p6), [#allocation2], %s1432_s14 }
  0x77   : > { %1173 = dma.done.wait (%p1523_p2), %s289_s21, 128  }
  0x78   : > { %1175 = vsyncadd (%p1523_p2), %s289_s21, 4294967168  ;;  %p1524_p1 = scmp.eq.s32.totalorder %s1268_s28, 0 }
  0x7a   : > { %1177 = dma.done.wait (%p1524_p1), [#allocation5], 4096   ;;  %p1525_p7 = pmov %p1524_p1 }
  0x7b   : > { %p1526_p11 = pmov %p1524_p1 }
  0x7c   : > { %1179 = vsyncadd (%p1525_p7), [#allocation5], 4294963200 }
  0x7d   : > { %1181 = dma.done.wait (%p1526_p11), [#allocation8], 2048   ;;  %p1527_p4 = pmov %p1524_p1 }
  0x7e   : > { %v1206_v0 = vmov 0.0|0.0   ;;  %vm1207_vm0 = vmmov 0   ;;  %v1208_v1 = vmov 0.0   ;;  %v339_v2 = vld [vmem:[#allocation4] sm:$0xff]  ;;  %v340_v3 = vld [vmem:[#allocation4 + $0x8] sm:$0xff]  ;;  %v341_v4 = vld [vmem:[#allocation4 + $0x10] sm:$0xff] }
  0x7f   : > { %1183 = vsyncadd (%p1527_p4), [#allocation8], 4294965248  ;;  %891 = vmatprep.subr.bf16.mxu0 %v1206_v0  ;;  %818 = vmatprep.mubr.msk.f32.mxu0 %vm1207_vm0, %v1208_v1  ;;  %v892_v5 = vpack.c.bf16 %v340_v3, %v339_v2  ;;  %v342_v6 = vld [vmem:[#allocation4 + $0x18] sm:$0xff]  ;;  %v343_v8 = vld [vmem:[#allocation4 + $0x20] sm:$0xff]  ;;  %p334_p5 = scmp.lt.s32.totalorder %s1268_s28, 1  ;;  %vm620_vm1 = vcmask 64512  }
  0x80   : > { %915 = vmatprep.subr.bf16.mxu1 %v1206_v0  ;;  %853 = vmatprep.mubr.msk.f32.mxu1 %vm1207_vm0, %v1208_v1  ;;  %v895_v7 = vpack.c.bf16 %v342_v6, %v341_v4  ;;  %v344_v9 = vld [vmem:[#allocation4 + $0x28] sm:$0xff]  ;;  %v433_v10 = vld [vmem:[#allocation6] sm:$0xff]  ;;  %v435_v12 = vld [vmem:[#allocation6 + $0x10] sm:$0xff] }
  0x81   : > { %893 = vmatpush3.bf16.msra.mxu0 %v892_v5  ;;  %v434_v11 = vld [vmem:[#allocation6 + $0x8] sm:$0xff]  ;;  %v436_v13 = vld [vmem:[#allocation6 + $0x18] sm:$0xff]  ;;  %v898_v14 = vpack.c.bf16 %v344_v9, %v343_v8  ;;  %v345_v16 = vld [vmem:[#allocation4 + $0x30] sm:$0xff]  ;;  %s1533_s28 = smov (!%p334_p5, %s1268_s28), 1 }
  0x82   : > { %894 = vmatprep.subr.bf16.mxu0 %v1206_v0  ;;  %v916_v15 = vpack.c.bf16 %v434_v11, %v433_v10  ;;  %v346_v17 = vld [vmem:[#allocation4 + $0x38] sm:$0xff]  ;;  %v919_v18 = vpack.c.bf16 %v436_v13, %v435_v12  ;;  %v437_v19 = vld [vmem:[#allocation6 + $0x20] sm:$0xff]  ;;  %v438_v20 = vld [vmem:[#allocation6 + $0x28] sm:$0xff]  ;;  %s729_s8 = sshll.u32 %s1533_s28, 3 }
  0x83   : > { %v901_v21 = vpack.c.bf16 %v346_v17, %v345_v16  ;;  %v347_v22 = vld [vmem:[#allocation4 + $0x40] sm:$0xff]  ;;  %v348_v23 = vld [vmem:[#allocation4 + $0x48] sm:$0xff]  ;;  %v922_v24 = vpack.c.bf16 %v438_v20, %v437_v19  ;;  %v439_v25 = vld [vmem:[#allocation6 + $0x30] sm:$0xff]  ;;  %s337_s23 = scalar_lea.vmem %s1513_s7, %s729_s8 }
  0x84   : > { %917 = vmatpush3.bf16.msra.mxu1 %v916_v15  ;;  %v440_v26 = vld [vmem:[#allocation6 + $0x38] sm:$0xff]  ;;  %v904_v27 = vpack.c.bf16 %v348_v23, %v347_v22  ;;  %v349_v28 = vld [vmem:[#allocation4 + $0x50] sm:$0xff]  ;;  %v441_v31 = vld [vmem:[#allocation6 + $0x40] sm:$0xff] }
  0x85   : > { %896 = vmatpush3.bf16.msra.mxu0 %v895_v7  ;;  %918 = vmatprep.subr.bf16.mxu1 %v1206_v0  ;;  %v350_v29 = vld [vmem:[#allocation4 + $0x58] sm:$0xff]  ;;  %v925_v30 = vpack.c.bf16 %v440_v26, %v439_v25  ;;  %v442_v32 = vld [vmem:[#allocation6 + $0x48] sm:$0xff]  ;;  %v351_v34 = vld [vmem:[#allocation4 + $0x60] sm:$0xff] }
  0x86   : > { %897 = vmatprep.subr.bf16.mxu0 %v1206_v0  ;;  %v907_v33 = vpack.c.bf16 %v350_v29, %v349_v28  ;;  %v352_v35 = vld [vmem:[#allocation4 + $0x68] sm:$0xff]  ;;  %v928_v36 = vpack.c.bf16 %v442_v32, %v441_v31  ;;  %v353_v38 = vld [vmem:[#allocation4 + $0x70] sm:$0xff]  ;;  %v354_v39 = vld [vmem:[#allocation4 + $0x78] sm:$0xff] }
  0x87   : > { %v910_v37 = vpack.c.bf16 %v352_v35, %v351_v34  ;;  %v913_v40 = vpack.c.bf16 %v354_v39, %v353_v38  ;;  %v338_v41 = vld [vmem:[%s292_s22] sm:$0xff]  ;;  %v445_v45 = vld [vmem:[#allocation6 + $0x60] sm:$0xff]  ;;  %v446_v46 = vld [vmem:[#allocation6 + $0x68] sm:$0xff] }
  0x88   : > { %920 = vmatpush3.bf16.msra.mxu1 %v919_v18  ;;  %v443_v42 = vld [vmem:[#allocation6 + $0x50] sm:$0xff]  ;;  %v444_v43 = vld [vmem:[#allocation6 + $0x58] sm:$0xff]  ;;  %v934_v47 = vpack.c.bf16 %v446_v46, %v445_v45  ;;  %v527_v51 = vld [vmem:[#allocation7] sm:$0xff] }
  0x89   : > { %899 = vmatpush3.bf16.msra.mxu0 %v898_v14  ;;  %921 = vmatprep.subr.bf16.mxu1 %v1206_v0  ;;  %v931_v44 = vpack.c.bf16 %v444_v43, %v443_v42  ;;  %v447_v48 = vld [vmem:[#allocation6 + $0x70] sm:$0xff]  ;;  %v448_v49 = vld [vmem:[#allocation6 + $0x78] sm:$0xff]  ;;  %v528_v52 = vld [vmem:[#allocation7 + $0x8] sm:$0xff] }
  0x8a   : > { %900 = vmatprep.subr.bf16.mxu0 %v1206_v0  ;;  %v937_v50 = vpack.c.bf16 %v448_v49, %v447_v48  ;;  %v529_v53 = vld [vmem:[#allocation7 + $0x10] sm:$0xff]  ;;  %v940_v54 = vpack.c.bf16 %v528_v52, %v527_v51  ;;  %v530_v55 = vld [vmem:[#allocation7 + $0x18] sm:$0xff]  ;;  %v531_v57 = vld [vmem:[#allocation7 + $0x20] sm:$0xff] }
  0x8b   : > { %v943_v56 = vpack.c.bf16 %v530_v55, %v529_v53  ;;  %v532_v58 = vld [vmem:[#allocation7 + $0x28] sm:$0xff]  ;;  %v533_v60 = vld [vmem:[#allocation7 + $0x30] sm:$0xff]  ;;  %v534_v61 = vld [vmem:[#allocation7 + $0x38] sm:$0xff] }
  0x8c   : > { %923 = vmatpush3.bf16.msra.mxu1 %v922_v24  ;;  %v946_v59 = vpack.c.bf16 %v532_v58, %v531_v57  ;;  %v949_v62 = vpack.c.bf16 %v534_v61, %v533_v60  ;;  %v535_v63 = vld [vmem:[#allocation7 + $0x40] sm:$0xff]  ;;  %v730_v3 = vld [vmem:[%s1508_s2] ss:$0 sm:$0xff]  ;;  %v538_v9 = vld [vmem:[#allocation7 + $0x58] sm:$0xff] }
  0x8d   : > { %902 = vmatpush3.bf16.msra.mxu0 %v901_v21  ;;  %924 = vmatprep.subr.bf16.mxu1 %v1206_v0  ;;  %v537_v8 = vld [vmem:[#allocation7 + $0x50] sm:$0xff]  ;;  %v539_v11 = vld [vmem:[#allocation7 + $0x60] sm:$0xff]  ;;  %v540_v12 = vld [vmem:[#allocation7 + $0x68] sm:$0xff] }
  0x8e   : > { %903 = vmatprep.subr.bf16.mxu0 %v1206_v0  ;;  %v955_v10 = vpack.c.bf16 %v538_v9, %v537_v8  ;;  %v958_v13 = vpack.c.bf16 %v540_v12, %v539_v11  ;;  %v541_v14 = vld [vmem:[#allocation7 + $0x70] sm:$0xff]  ;;  %v542_v15 = vld [vmem:[#allocation7 + $0x78] sm:$0xff] }
  0x8f   : > { %v961_v16 = vpack.c.bf16 %v542_v15, %v541_v14  ;;  %v731_v17 = vld [vmem:[%s1510_s4] ss:$0 sm:$0xff] }
  0x90   : > { %926 = vmatpush3.bf16.msra.mxu1 %v925_v30  ;;  %v732_v22 = vld [vmem:[%s1512_s6] ss:$0 sm:$0xff] }
  0x91   : > { %905 = vmatpush3.bf16.msra.mxu0 %v904_v27  ;;  %927 = vmatprep.subr.bf16.mxu1 %v1206_v0 }
  0x92   : > { %906 = vmatprep.subr.bf16.mxu0 %v1206_v0 }
  0x94   : > { %929 = vmatpush3.bf16.msra.mxu1 %v928_v36 }
  0x95   : > { %908 = vmatpush3.bf16.msra.mxu0 %v907_v33  ;;  %930 = vmatprep.subr.bf16.mxu1 %v1206_v0 }
  0x96   : > { %909 = vmatprep.subr.bf16.mxu0 %v1206_v0 }
  0x98   : > { %932 = vmatpush3.bf16.msra.mxu1 %v931_v44 }
  0x99   : > { %911 = vmatpush3.bf16.msra.mxu0 %v910_v37  ;;  %933 = vmatprep.subr.bf16.mxu1 %v1206_v0 }
  0x9a   : > { %912 = vmatprep.subr.bf16.mxu0 %v1206_v0 }
  0x9c   : > { %935 = vmatpush3.bf16.msra.mxu1 %v934_v47 }
  0x9d   : > { %914 = vmatpush3.bf16.msra.mxu0 %v913_v40  ;;  %936 = vmatprep.subr.bf16.mxu1 %v1206_v0 }
  0x9e   : > { %939 = vmatprep.subr.bf16.mxu0 %v1206_v0 }
  0xa0   : > { %819 = vmatmul.mubr.f32.vlgmr.msra.gmra.mrb[0].mxu0 %v338_v41  ;;  %938 = vmatpush3.bf16.msra.mxu1 %v937_v50 }
  0xa1   : > { %888 = vmatprep.mubr.msk.f32.mxu0 %vm1207_vm0, %v1208_v1  ;;  %941 = vmatpush3.bf16.msra.mxu0 %v940_v54  ;;  %v536_v1 = vld [vmem:[#allocation7 + $0x48] sm:$0xff] }
  0xa2   : > { %942 = vmatprep.subr.bf16.mxu0 %v1206_v0  ;;  %v952_v2 = vpack.c.bf16 %v536_v1, %v535_v63 }
  0xa5   : > { %944 = vmatpush3.bf16.msra.mxu0 %v943_v56 }
  0xa6   : > { %945 = vmatprep.subr.bf16.mxu0 %v1206_v0 }
  0xa9   : > { %947 = vmatpush3.bf16.msra.mxu0 %v946_v59 }
  0xaa   : > { %948 = vmatprep.subr.bf16.mxu0 %v1206_v0 }
  0xad   : > { %950 = vmatpush3.bf16.msra.mxu0 %v949_v62 }
  0xae   : > { %951 = vmatprep.subr.bf16.mxu0 %v1206_v0 }
  0xb1   : > { %953 = vmatpush3.bf16.msra.mxu0 %v952_v2 }
  0xb2   : > { %954 = vmatprep.subr.bf16.mxu0 %v1206_v0 }
  0xb5   : > { %956 = vmatpush3.bf16.msra.mxu0 %v955_v10 }
  0xb6   : > { %957 = vmatprep.subr.bf16.mxu0 %v1206_v0 }
  0xb9   : > { %959 = vmatpush3.bf16.msra.mxu0 %v958_v13 }
  0xba   : > { %960 = vmatprep.subr.bf16.mxu0 %v1206_v0 }
  0xbd   : > { %962 = vmatpush3.bf16.msra.mxu0 %v961_v16 }
 0x173   : > { %v428_v4 = vpop.f32.mrb[0].mxu0 }
 0x174   : > { %v429_v5 = vadd.f32 %v730_v3, %v428_v4  ;;  %v820_v6 = vpop.f32.mrb[1].mxu0 }
 0x176   : > { %1038 = vtanh.f32 %v429_v5 }
 0x180   : > { %v1039_v7 = vpop.eup %1038 }
 0x181   : > { %854 = vmatmul.mubr.f32.vlgmr.msra.gmra.mrb[0].mxu1 %v1039_v7 }
 0x254   : > { %v522_v18 = vpop.f32.mrb[0].mxu1 }
 0x255   : > { %v523_v19 = vadd.f32 %v731_v17, %v522_v18  ;;  %v855_v20 = vpop.f32.mrb[1].mxu1 }
 0x257   : > { %1040 = vtanh.f32 %v523_v19 }
 0x261   : > { %v1041_v21 = vpop.eup %1040 }
 0x262   : > { %889 = vmatmul.mubr.f32.vlgmr.msra.gmra.mrb[2].mxu0 %v1041_v21 }
 0x335   : > { %v616_v0 = vpop.f32.mrb[2].mxu0 }
 0x336   : > { %v617_v23 = vadd.f32 %v732_v22, %v616_v0  ;;  %v890_v24 = vpop.f32.mrb[3].mxu0 }
 0x338   : > { %621 = vst.msk [vmem:[%s337_s23] sm:$0xff] %vm620_vm1, %v617_v23 }
 0x339 PF: > { %p19_p9 = scmp.ge.s32.totalorder %s1379_s20, 4   ;;  %s1528_s24 = smov %s1190_s25 }
 0x33a   : > { %s1529_s25 = smov %s1194_s26  ;;  %s1530_s26 = smov %s1389_s11 }
 0x33b   : > { %s1531_s27 = smov %s1379_s20  ;;  %21 = sbr.rel (!%p19_p9) target bundleno = 5 (0x5), region = 100 }
 0x342   :  { %641 = vsyncpa [#allocation3], 1 }
 0x343   :  { %643 = vsyncpa [#allocation3 + $0x1], 1 }
 0x344   :  { %644 = vsyncpa [#allocation5], 1 }
 0x345   :  { %645 = vsyncpa [#allocation8], 1 }

</bundles_post_ra>
